<compile_context>
chip_gen: v5e
topology: v5e:2x2
jax: 0.10.0
libtpu: 0.0.40
codegen_flags: <defaults>
</compile_context>

<pallas_src>
import jax
import jax.numpy as jnp
from jax import lax
from jax.experimental import pallas as pl
from jax.experimental.pallas import tpu as pltpu

# ---- module constants (from the PyTorch file) -------------------------------
INPUT_SIZE = 14      # len(char_encodings[0])
HIDDEN_SIZE = 64
OUTPUT_SIZE = 7      # len(emoji_list)
OUT_PAD = 128        # lane-dense output width (sliced back to OUTPUT_SIZE outside)


def lstm_kernel(gx_ref, whh_ref, wfc_ref, bfc_ref, out_ref):
    """Single-invocation kernel: whole recurrence + lane-padded FC head.

    gx_ref : (T, B, 4H) precomputed input projection with folded biases
    whh_ref: (H, 4H)    recurrent weights (pre-transposed)
    wfc_ref: (H, 128)   FC weights, zero-padded along lanes
    bfc_ref: (1, 128)   FC bias, zero-padded along lanes
    out_ref: (B, 128)
    """
    T, B, _ = gx_ref.shape
    H = whh_ref.shape[0]

    # Hoisted out of the (unrolled) time loop: recurrent weights and the
    # per-lane pre-scale used to fold tanh(g) into a full-lane sigmoid.
    whh = whh_ref[...]                                                  # (H, 4H)
    go_scale = jnp.concatenate(
        [jnp.full((1, H), 2.0, jnp.float32), jnp.ones((1, H), jnp.float32)],
        axis=1)                                                         # (1, 2H)

    def step(t, carry):
        h, c = carry
        # Only one MXU op on the recurrent critical path.
        gates = gx_ref[t] + jnp.dot(h, whh,
                                    preferred_element_type=jnp.float32)  # (B, 4H)
        # i|f occupy exactly one 128-lane vreg (H=64): one fused sigmoid.
        if_act = jax.nn.sigmoid(gates[:, :2 * H])
        i_g = if_act[:, :H]
        f_g = if_act[:, H:]
        # g|o in one fused sigmoid: tanh(g) = 2*sigmoid(2*g) - 1 (exact).
        go_act = jax.nn.sigmoid(gates[:, 2 * H:] * go_scale)
        g_g = 2.0 * go_act[:, :H] - 1.0
        o_g = go_act[:, H:]
        c = f_g * c + i_g * g_g
        h = o_g * jnp.tanh(c)
        return (h, c)

    h0 = jnp.zeros((B, H), jnp.float32)
    c0 = jnp.zeros((B, H), jnp.float32)
    # h/c stay in vregs across the (statically unrolled) time loop.
    h, _ = lax.fori_loop(0, T, step, (h0, c0), unroll=True)

    # FC head: lane-dense (B, 128) store; wrapper slices back to (B, O).
    out_ref[...] = (jnp.dot(h, wfc_ref[...], preferred_element_type=jnp.float32)
                    + bfc_ref[...]).astype(out_ref.dtype)


@jax.jit
def many_to_one_lstm(x, w_ih, w_hh, b_ih, b_hh, w_fc, b_fc):
    """x: (B, T, I) batch-first float32.  Returns (B, OUTPUT_SIZE)."""
    B, T, I = x.shape
    H = w_hh.shape[1]          # w_hh: (4H, H)
    O = w_fc.shape[0]          # w_fc: (O, H)

    # Hoisted input projection: one (T*B, I)@(I, 4H) matmul for all timesteps,
    # result in time-major layout, with both LSTM biases folded in.
    gates_x = (jnp.einsum('bti,gi->tbg', x, w_ih)
               + (b_ih + b_hh)[None, None, :]).astype(jnp.float32)     # (T, B, 4H)

    whh_t = jnp.transpose(w_hh)                                        # (H, 4H)
    # Lane-pad the FC head so the kernel's output store is unmasked.
    wfc_pad = jnp.zeros((H, OUT_PAD), jnp.float32).at[:, :O].set(jnp.transpose(w_fc))
    bfc_pad = jnp.zeros((1, OUT_PAD), jnp.float32).at[:, :O].set(b_fc)

    # Single grid step: the whole (tiny) problem is VMEM-resident and the time
    # loop lives inside the kernel, so there is no per-step pipeline overhead.
    # TODO(synk): for large batched workloads, add a leading batch-chunk grid
    # axis marked "parallel" so v7x's second TensorCore processes half the batch.
    out_pad = pl.pallas_call(
        lstm_kernel,
        out_shape=jax.ShapeDtypeStruct((B, OUT_PAD), jnp.float32),
        in_specs=[
            pl.BlockSpec(memory_space=pltpu.MemorySpace.VMEM),   # gates_x (T,B,4H)
            pl.BlockSpec(memory_space=pltpu.MemorySpace.VMEM),   # W_hh^T   (H,4H)
            pl.BlockSpec(memory_space=pltpu.MemorySpace.VMEM),   # W_fc^T   (H,128)
            pl.BlockSpec(memory_space=pltpu.MemorySpace.VMEM),   # b_fc     (1,128)
        ],
        out_specs=pl.BlockSpec(memory_space=pltpu.MemorySpace.VMEM),
    )(gates_x, whh_t, wfc_pad, bfc_pad)

    return out_pad[:, :O]


def reference_forward(x, w_ih, w_hh, b_ih, b_hh, w_fc, b_fc):
    """Pure-JAX reference matching torch.nn.LSTM(batch_first) + Linear."""
    B, T, _ = x.shape
    H = w_hh.shape[1]
    h = jnp.zeros((B, H), jnp.float32)
    c = jnp.zeros((B, H), jnp.float32)

    def step(carry, x_t):
        h, c = carry
        gates = x_t @ w_ih.T + b_ih + h @ w_hh.T + b_hh
        i = jax.nn.sigmoid(gates[:, 0 * H:1 * H])
        f = jax.nn.sigmoid(gates[:, 1 * H:2 * H])
        g = jnp.tanh(gates[:, 2 * H:3 * H])
        o = jax.nn.sigmoid(gates[:, 3 * H:4 * H])
        c = f * c + i * g
        h = o * jnp.tanh(c)
        return (h, c), None

    (h, _), _ = lax.scan(step, (h, c), jnp.transpose(x, (1, 0, 2)))
    return h @ w_fc.T + b_fc


if __name__ == "__main__":
    B, T = 2, 8
    I, H, O = INPUT_SIZE, HIDDEN_SIZE, OUTPUT_SIZE

    key = jax.random.PRNGKey(0)
    k = jax.random.split(key, 8)

    # Deterministic PyTorch-style init: U(-1/sqrt(H), 1/sqrt(H))
    s = 1.0 / jnp.sqrt(jnp.float32(H))
    w_ih = jax.random.uniform(k[0], (4 * H, I), jnp.float32, -s, s)
    w_hh = jax.random.uniform(k[1], (4 * H, H), jnp.float32, -s, s)
    b_ih = jax.random.uniform(k[2], (4 * H,), jnp.float32, -s, s)
    b_hh = jax.random.uniform(k[3], (4 * H,), jnp.float32, -s, s)
    w_fc = jax.random.uniform(k[4], (O, H), jnp.float32, -s, s)
    b_fc = jax.random.uniform(k[5], (O,), jnp.float32, -s, s)

    # One-hot character-encoding sequences, like the module's char_encodings.
    idx = jax.random.randint(k[6], (B, T), 0, I)
    x = jax.nn.one_hot(idx, I, dtype=jnp.float32)     # (B, T, I)

    out = many_to_one_lstm(x, w_ih, w_hh, b_ih, b_hh, w_fc, b_fc)
    out = jax.block_until_ready(out)

    ref = reference_forward(x, w_ih, w_hh, b_ih, b_hh, w_fc, b_fc)
    assert out.shape == (B, O)
    assert jnp.allclose(out, ref, atol=1e-5, rtol=1e-5), "mismatch vs reference"

    print("KERNEL_OK")
</pallas_src>

<mosaic_0001>
module attributes {stable_mosaic.version = 11 : i64} {
  func.func @lstm_kernel(%arg0: memref<8x2x256xf32, #tpu.memory_space<vmem>>, %arg1: memref<64x256xf32, #tpu.memory_space<vmem>>, %arg2: memref<64x128xf32, #tpu.memory_space<vmem>>, %arg3: memref<1x128xf32, #tpu.memory_space<vmem>>, %arg4: memref<2x128xf32, #tpu.memory_space<vmem>>) attributes {dimension_semantics = [], scalar_prefetch = 0 : i64, scratch_operands = 0 : i64, tpu.core_type = #tpu.core_type<tc>} {
    %c0 = arith.constant 0 : index
    %c0_0 = arith.constant 0 : index
    %0 = vector.load %arg1[%c0, %c0_0] : memref<64x256xf32, #tpu.memory_space<vmem>>, vector<64x256xf32>
    %cst = arith.constant 2.000000e+00 : f32
    %1 = vector.broadcast %cst : f32 to vector<1x64xf32>
    %cst_1 = arith.constant 1.000000e+00 : f32
    %2 = vector.broadcast %cst_1 : f32 to vector<1x64xf32>
    %3 = tpu.concatenate %1, %2 in 1 : vector<1x64xf32>, vector<1x64xf32> -> vector<1x128xf32>
    %cst_2 = arith.constant 0.000000e+00 : f32
    %4 = vector.broadcast %cst_2 : f32 to vector<2x64xf32>
    %cst_3 = arith.constant 0.000000e+00 : f32
    %5 = vector.broadcast %cst_3 : f32 to vector<2x64xf32>
    %c0_i32 = arith.constant 0 : i32
    %6 = arith.index_cast %c0_i32 : i32 to index
    %c0_4 = arith.constant 0 : index
    %c0_5 = arith.constant 0 : index
    %7 = vector.load %arg0[%6, %c0_4, %c0_5] : memref<8x2x256xf32, #tpu.memory_space<vmem>>, vector<1x2x256xf32>
    %8 = vector.shape_cast %7 : vector<1x2x256xf32> to vector<2x256xf32>
    %cst_6 = arith.constant dense<0.000000e+00> : vector<2x256xf32>
    %9 = tpu.matmul %4, %0, %cst_6 {dimension_numbers = #tpu.dot_dimension_numbers<[1], [0], [0], [1], [0, 0, 1, 1], [], []>} : vector<2x64xf32>, vector<64x256xf32>, vector<2x256xf32> -> vector<2x256xf32>
    %10 = arith.addf %8, %9 : vector<2x256xf32>
    %11 = vector.extract_strided_slice %10 {offsets = [0, 0], sizes = [2, 128], strides = [1, 1]} : vector<2x256xf32> to vector<2x128xf32>
    %12 = arith.negf %11 : vector<2x128xf32>
    %13 = math.exp %12 : vector<2x128xf32>
    %cst_7 = arith.constant 1.000000e+00 : f32
    %14 = vector.broadcast %cst_7 : f32 to vector<2x128xf32>
    %15 = arith.addf %14, %13 : vector<2x128xf32>
    %16 = arith.divf %14, %15 : vector<2x128xf32>
    %17 = vector.extract_strided_slice %16 {offsets = [0, 0], sizes = [2, 64], strides = [1, 1]} : vector<2x128xf32> to vector<2x64xf32>
    %18 = vector.extract_strided_slice %16 {offsets = [0, 64], sizes = [2, 64], strides = [1, 1]} : vector<2x128xf32> to vector<2x64xf32>
    %19 = vector.extract_strided_slice %10 {offsets = [0, 128], sizes = [2, 128], strides = [1, 1]} : vector<2x256xf32> to vector<2x128xf32>
    %20 = vector.broadcast %3 : vector<1x128xf32> to vector<2x128xf32>
    %21 = arith.mulf %19, %20 : vector<2x128xf32>
    %22 = arith.negf %21 : vector<2x128xf32>
    %23 = math.exp %22 : vector<2x128xf32>
    %cst_8 = arith.constant 1.000000e+00 : f32
    %24 = vector.broadcast %cst_8 : f32 to vector<2x128xf32>
    %25 = arith.addf %24, %23 : vector<2x128xf32>
    %26 = arith.divf %24, %25 : vector<2x128xf32>
    %27 = vector.extract_strided_slice %26 {offsets = [0, 0], sizes = [2, 64], strides = [1, 1]} : vector<2x128xf32> to vector<2x64xf32>
    %cst_9 = arith.constant 2.000000e+00 : f32
    %28 = vector.broadcast %cst_9 : f32 to vector<2x64xf32>
    %29 = arith.mulf %28, %27 : vector<2x64xf32>
    %cst_10 = arith.constant 1.000000e+00 : f32
    %30 = vector.broadcast %cst_10 : f32 to vector<2x64xf32>
    %31 = arith.subf %29, %30 : vector<2x64xf32>
    %32 = vector.extract_strided_slice %26 {offsets = [0, 64], sizes = [2, 64], strides = [1, 1]} : vector<2x128xf32> to vector<2x64xf32>
    %33 = arith.mulf %18, %5 : vector<2x64xf32>
    %34 = arith.mulf %17, %31 : vector<2x64xf32>
    %35 = arith.addf %33, %34 : vector<2x64xf32>
    %36 = math.tanh %35 : vector<2x64xf32>
    %37 = arith.mulf %32, %36 : vector<2x64xf32>
    %c1_i32 = arith.constant 1 : i32
    %38 = arith.index_cast %c1_i32 : i32 to index
    %c0_11 = arith.constant 0 : index
    %c0_12 = arith.constant 0 : index
    %39 = vector.load %arg0[%38, %c0_11, %c0_12] : memref<8x2x256xf32, #tpu.memory_space<vmem>>, vector<1x2x256xf32>
    %40 = vector.shape_cast %39 : vector<1x2x256xf32> to vector<2x256xf32>
    %cst_13 = arith.constant dense<0.000000e+00> : vector<2x256xf32>
    %41 = tpu.matmul %37, %0, %cst_13 {dimension_numbers = #tpu.dot_dimension_numbers<[1], [0], [0], [1], [0, 0, 1, 1], [], []>} : vector<2x64xf32>, vector<64x256xf32>, vector<2x256xf32> -> vector<2x256xf32>
    %42 = arith.addf %40, %41 : vector<2x256xf32>
    %43 = vector.extract_strided_slice %42 {offsets = [0, 0], sizes = [2, 128], strides = [1, 1]} : vector<2x256xf32> to vector<2x128xf32>
    %44 = arith.negf %43 : vector<2x128xf32>
    %45 = math.exp %44 : vector<2x128xf32>
    %cst_14 = arith.constant 1.000000e+00 : f32
    %46 = vector.broadcast %cst_14 : f32 to vector<2x128xf32>
    %47 = arith.addf %46, %45 : vector<2x128xf32>
    %48 = arith.divf %46, %47 : vector<2x128xf32>
    %49 = vector.extract_strided_slice %48 {offsets = [0, 0], sizes = [2, 64], strides = [1, 1]} : vector<2x128xf32> to vector<2x64xf32>
    %50 = vector.extract_strided_slice %48 {offsets = [0, 64], sizes = [2, 64], strides = [1, 1]} : vector<2x128xf32> to vector<2x64xf32>
    %51 = vector.extract_strided_slice %42 {offsets = [0, 128], sizes = [2, 128], strides = [1, 1]} : vector<2x256xf32> to vector<2x128xf32>
    %52 = vector.broadcast %3 : vector<1x128xf32> to vector<2x128xf32>
    %53 = arith.mulf %51, %52 : vector<2x128xf32>
    %54 = arith.negf %53 : vector<2x128xf32>
    %55 = math.exp %54 : vector<2x128xf32>
    %cst_15 = arith.constant 1.000000e+00 : f32
    %56 = vector.broadcast %cst_15 : f32 to vector<2x128xf32>
    %57 = arith.addf %56, %55 : vector<2x128xf32>
    %58 = arith.divf %56, %57 : vector<2x128xf32>
    %59 = vector.extract_strided_slice %58 {offsets = [0, 0], sizes = [2, 64], strides = [1, 1]} : vector<2x128xf32> to vector<2x64xf32>
    %cst_16 = arith.constant 2.000000e+00 : f32
    %60 = vector.broadcast %cst_16 : f32 to vector<2x64xf32>
    %61 = arith.mulf %60, %59 : vector<2x64xf32>
    %cst_17 = arith.constant 1.000000e+00 : f32
    %62 = vector.broadcast %cst_17 : f32 to vector<2x64xf32>
    %63 = arith.subf %61, %62 : vector<2x64xf32>
    %64 = vector.extract_strided_slice %58 {offsets = [0, 64], sizes = [2, 64], strides = [1, 1]} : vector<2x128xf32> to vector<2x64xf32>
    %65 = arith.mulf %50, %35 : vector<2x64xf32>
    %66 = arith.mulf %49, %63 : vector<2x64xf32>
    %67 = arith.addf %65, %66 : vector<2x64xf32>
    %68 = math.tanh %67 : vector<2x64xf32>
    %69 = arith.mulf %64, %68 : vector<2x64xf32>
    %c2_i32 = arith.constant 2 : i32
    %70 = arith.index_cast %c2_i32 : i32 to index
    %c0_18 = arith.constant 0 : index
    %c0_19 = arith.constant 0 : index
    %71 = vector.load %arg0[%70, %c0_18, %c0_19] : memref<8x2x256xf32, #tpu.memory_space<vmem>>, vector<1x2x256xf32>
    %72 = vector.shape_cast %71 : vector<1x2x256xf32> to vector<2x256xf32>
    %cst_20 = arith.constant dense<0.000000e+00> : vector<2x256xf32>
    %73 = tpu.matmul %69, %0, %cst_20 {dimension_numbers = #tpu.dot_dimension_numbers<[1], [0], [0], [1], [0, 0, 1, 1], [], []>} : vector<2x64xf32>, vector<64x256xf32>, vector<2x256xf32> -> vector<2x256xf32>
    %74 = arith.addf %72, %73 : vector<2x256xf32>
    %75 = vector.extract_strided_slice %74 {offsets = [0, 0], sizes = [2, 128], strides = [1, 1]} : vector<2x256xf32> to vector<2x128xf32>
    %76 = arith.negf %75 : vector<2x128xf32>
    %77 = math.exp %76 : vector<2x128xf32>
    %cst_21 = arith.constant 1.000000e+00 : f32
    %78 = vector.broadcast %cst_21 : f32 to vector<2x128xf32>
    %79 = arith.addf %78, %77 : vector<2x128xf32>
    %80 = arith.divf %78, %79 : vector<2x128xf32>
    %81 = vector.extract_strided_slice %80 {offsets = [0, 0], sizes = [2, 64], strides = [1, 1]} : vector<2x128xf32> to vector<2x64xf32>
    %82 = vector.extract_strided_slice %80 {offsets = [0, 64], sizes = [2, 64], strides = [1, 1]} : vector<2x128xf32> to vector<2x64xf32>
    %83 = vector.extract_strided_slice %74 {offsets = [0, 128], sizes = [2, 128], strides = [1, 1]} : vector<2x256xf32> to vector<2x128xf32>
    %84 = vector.broadcast %3 : vector<1x128xf32> to vector<2x128xf32>
    %85 = arith.mulf %83, %84 : vector<2x128xf32>
    %86 = arith.negf %85 : vector<2x128xf32>
    %87 = math.exp %86 : vector<2x128xf32>
    %cst_22 = arith.constant 1.000000e+00 : f32
    %88 = vector.broadcast %cst_22 : f32 to vector<2x128xf32>
    %89 = arith.addf %88, %87 : vector<2x128xf32>
    %90 = arith.divf %88, %89 : vector<2x128xf32>
    %91 = vector.extract_strided_slice %90 {offsets = [0, 0], sizes = [2, 64], strides = [1, 1]} : vector<2x128xf32> to vector<2x64xf32>
    %cst_23 = arith.constant 2.000000e+00 : f32
    %92 = vector.broadcast %cst_23 : f32 to vector<2x64xf32>
    %93 = arith.mulf %92, %91 : vector<2x64xf32>
    %cst_24 = arith.constant 1.000000e+00 : f32
    %94 = vector.broadcast %cst_24 : f32 to vector<2x64xf32>
    %95 = arith.subf %93, %94 : vector<2x64xf32>
    %96 = vector.extract_strided_slice %90 {offsets = [0, 64], sizes = [2, 64], strides = [1, 1]} : vector<2x128xf32> to vector<2x64xf32>
    %97 = arith.mulf %82, %67 : vector<2x64xf32>
    %98 = arith.mulf %81, %95 : vector<2x64xf32>
    %99 = arith.addf %97, %98 : vector<2x64xf32>
    %100 = math.tanh %99 : vector<2x64xf32>
    %101 = arith.mulf %96, %100 : vector<2x64xf32>
    %c3_i32 = arith.constant 3 : i32
    %102 = arith.index_cast %c3_i32 : i32 to index
    %c0_25 = arith.constant 0 : index
    %c0_26 = arith.constant 0 : index
    %103 = vector.load %arg0[%102, %c0_25, %c0_26] : memref<8x2x256xf32, #tpu.memory_space<vmem>>, vector<1x2x256xf32>
    %104 = vector.shape_cast %103 : vector<1x2x256xf32> to vector<2x256xf32>
    %cst_27 = arith.constant dense<0.000000e+00> : vector<2x256xf32>
    %105 = tpu.matmul %101, %0, %cst_27 {dimension_numbers = #tpu.dot_dimension_numbers<[1], [0], [0], [1], [0, 0, 1, 1], [], []>} : vector<2x64xf32>, vector<64x256xf32>, vector<2x256xf32> -> vector<2x256xf32>
    %106 = arith.addf %104, %105 : vector<2x256xf32>
    %107 = vector.extract_strided_slice %106 {offsets = [0, 0], sizes = [2, 128], strides = [1, 1]} : vector<2x256xf32> to vector<2x128xf32>
    %108 = arith.negf %107 : vector<2x128xf32>
    %109 = math.exp %108 : vector<2x128xf32>
    %cst_28 = arith.constant 1.000000e+00 : f32
    %110 = vector.broadcast %cst_28 : f32 to vector<2x128xf32>
    %111 = arith.addf %110, %109 : vector<2x128xf32>
    %112 = arith.divf %110, %111 : vector<2x128xf32>
    %113 = vector.extract_strided_slice %112 {offsets = [0, 0], sizes = [2, 64], strides = [1, 1]} : vector<2x128xf32> to vector<2x64xf32>
    %114 = vector.extract_strided_slice %112 {offsets = [0, 64], sizes = [2, 64], strides = [1, 1]} : vector<2x128xf32> to vector<2x64xf32>
    %115 = vector.extract_strided_slice %106 {offsets = [0, 128], sizes = [2, 128], strides = [1, 1]} : vector<2x256xf32> to vector<2x128xf32>
    %116 = vector.broadcast %3 : vector<1x128xf32> to vector<2x128xf32>
    %117 = arith.mulf %115, %116 : vector<2x128xf32>
    %118 = arith.negf %117 : vector<2x128xf32>
    %119 = math.exp %118 : vector<2x128xf32>
    %cst_29 = arith.constant 1.000000e+00 : f32
    %120 = vector.broadcast %cst_29 : f32 to vector<2x128xf32>
    %121 = arith.addf %120, %119 : vector<2x128xf32>
    %122 = arith.divf %120, %121 : vector<2x128xf32>
    %123 = vector.extract_strided_slice %122 {offsets = [0, 0], sizes = [2, 64], strides = [1, 1]} : vector<2x128xf32> to vector<2x64xf32>
    %cst_30 = arith.constant 2.000000e+00 : f32
    %124 = vector.broadcast %cst_30 : f32 to vector<2x64xf32>
    %125 = arith.mulf %124, %123 : vector<2x64xf32>
    %cst_31 = arith.constant 1.000000e+00 : f32
    %126 = vector.broadcast %cst_31 : f32 to vector<2x64xf32>
    %127 = arith.subf %125, %126 : vector<2x64xf32>
    %128 = vector.extract_strided_slice %122 {offsets = [0, 64], sizes = [2, 64], strides = [1, 1]} : vector<2x128xf32> to vector<2x64xf32>
    %129 = arith.mulf %114, %99 : vector<2x64xf32>
    %130 = arith.mulf %113, %127 : vector<2x64xf32>
    %131 = arith.addf %129, %130 : vector<2x64xf32>
    %132 = math.tanh %131 : vector<2x64xf32>
    %133 = arith.mulf %128, %132 : vector<2x64xf32>
    %c4_i32 = arith.constant 4 : i32
    %134 = arith.index_cast %c4_i32 : i32 to index
    %c0_32 = arith.constant 0 : index
    %c0_33 = arith.constant 0 : index
    %135 = vector.load %arg0[%134, %c0_32, %c0_33] : memref<8x2x256xf32, #tpu.memory_space<vmem>>, vector<1x2x256xf32>
    %136 = vector.shape_cast %135 : vector<1x2x256xf32> to vector<2x256xf32>
    %cst_34 = arith.constant dense<0.000000e+00> : vector<2x256xf32>
    %137 = tpu.matmul %133, %0, %cst_34 {dimension_numbers = #tpu.dot_dimension_numbers<[1], [0], [0], [1], [0, 0, 1, 1], [], []>} : vector<2x64xf32>, vector<64x256xf32>, vector<2x256xf32> -> vector<2x256xf32>
    %138 = arith.addf %136, %137 : vector<2x256xf32>
    %139 = vector.extract_strided_slice %138 {offsets = [0, 0], sizes = [2, 128], strides = [1, 1]} : vector<2x256xf32> to vector<2x128xf32>
    %140 = arith.negf %139 : vector<2x128xf32>
    %141 = math.exp %140 : vector<2x128xf32>
    %cst_35 = arith.constant 1.000000e+00 : f32
    %142 = vector.broadcast %cst_35 : f32 to vector<2x128xf32>
    %143 = arith.addf %142, %141 : vector<2x128xf32>
    %144 = arith.divf %142, %143 : vector<2x128xf32>
    %145 = vector.extract_strided_slice %144 {offsets = [0, 0], sizes = [2, 64], strides = [1, 1]} : vector<2x128xf32> to vector<2x64xf32>
    %146 = vector.extract_strided_slice %144 {offsets = [0, 64], sizes = [2, 64], strides = [1, 1]} : vector<2x128xf32> to vector<2x64xf32>
    %147 = vector.extract_strided_slice %138 {offsets = [0, 128], sizes = [2, 128], strides = [1, 1]} : vector<2x256xf32> to vector<2x128xf32>
    %148 = vector.broadcast %3 : vector<1x128xf32> to vector<2x128xf32>
    %149 = arith.mulf %147, %148 : vector<2x128xf32>
    %150 = arith.negf %149 : vector<2x128xf32>
    %151 = math.exp %150 : vector<2x128xf32>
    %cst_36 = arith.constant 1.000000e+00 : f32
    %152 = vector.broadcast %cst_36 : f32 to vector<2x128xf32>
    %153 = arith.addf %152, %151 : vector<2x128xf32>
    %154 = arith.divf %152, %153 : vector<2x128xf32>
    %155 = vector.extract_strided_slice %154 {offsets = [0, 0], sizes = [2, 64], strides = [1, 1]} : vector<2x128xf32> to vector<2x64xf32>
    %cst_37 = arith.constant 2.000000e+00 : f32
    %156 = vector.broadcast %cst_37 : f32 to vector<2x64xf32>
    %157 = arith.mulf %156, %155 : vector<2x64xf32>
    %cst_38 = arith.constant 1.000000e+00 : f32
    %158 = vector.broadcast %cst_38 : f32 to vector<2x64xf32>
    %159 = arith.subf %157, %158 : vector<2x64xf32>
    %160 = vector.extract_strided_slice %154 {offsets = [0, 64], sizes = [2, 64], strides = [1, 1]} : vector<2x128xf32> to vector<2x64xf32>
    %161 = arith.mulf %146, %131 : vector<2x64xf32>
    %162 = arith.mulf %145, %159 : vector<2x64xf32>
    %163 = arith.addf %161, %162 : vector<2x64xf32>
    %164 = math.tanh %163 : vector<2x64xf32>
    %165 = arith.mulf %160, %164 : vector<2x64xf32>
    %c5_i32 = arith.constant 5 : i32
    %166 = arith.index_cast %c5_i32 : i32 to index
    %c0_39 = arith.constant 0 : index
    %c0_40 = arith.constant 0 : index
    %167 = vector.load %arg0[%166, %c0_39, %c0_40] : memref<8x2x256xf32, #tpu.memory_space<vmem>>, vector<1x2x256xf32>
    %168 = vector.shape_cast %167 : vector<1x2x256xf32> to vector<2x256xf32>
    %cst_41 = arith.constant dense<0.000000e+00> : vector<2x256xf32>
    %169 = tpu.matmul %165, %0, %cst_41 {dimension_numbers = #tpu.dot_dimension_numbers<[1], [0], [0], [1], [0, 0, 1, 1], [], []>} : vector<2x64xf32>, vector<64x256xf32>, vector<2x256xf32> -> vector<2x256xf32>
    %170 = arith.addf %168, %169 : vector<2x256xf32>
    %171 = vector.extract_strided_slice %170 {offsets = [0, 0], sizes = [2, 128], strides = [1, 1]} : vector<2x256xf32> to vector<2x128xf32>
    %172 = arith.negf %171 : vector<2x128xf32>
    %173 = math.exp %172 : vector<2x128xf32>
    %cst_42 = arith.constant 1.000000e+00 : f32
    %174 = vector.broadcast %cst_42 : f32 to vector<2x128xf32>
    %175 = arith.addf %174, %173 : vector<2x128xf32>
    %176 = arith.divf %174, %175 : vector<2x128xf32>
    %177 = vector.extract_strided_slice %176 {offsets = [0, 0], sizes = [2, 64], strides = [1, 1]} : vector<2x128xf32> to vector<2x64xf32>
    %178 = vector.extract_strided_slice %176 {offsets = [0, 64], sizes = [2, 64], strides = [1, 1]} : vector<2x128xf32> to vector<2x64xf32>
    %179 = vector.extract_strided_slice %170 {offsets = [0, 128], sizes = [2, 128], strides = [1, 1]} : vector<2x256xf32> to vector<2x128xf32>
    %180 = vector.broadcast %3 : vector<1x128xf32> to vector<2x128xf32>
    %181 = arith.mulf %179, %180 : vector<2x128xf32>
    %182 = arith.negf %181 : vector<2x128xf32>
    %183 = math.exp %182 : vector<2x128xf32>
    %cst_43 = arith.constant 1.000000e+00 : f32
    %184 = vector.broadcast %cst_43 : f32 to vector<2x128xf32>
    %185 = arith.addf %184, %183 : vector<2x128xf32>
    %186 = arith.divf %184, %185 : vector<2x128xf32>
    %187 = vector.extract_strided_slice %186 {offsets = [0, 0], sizes = [2, 64], strides = [1, 1]} : vector<2x128xf32> to vector<2x64xf32>
    %cst_44 = arith.constant 2.000000e+00 : f32
    %188 = vector.broadcast %cst_44 : f32 to vector<2x64xf32>
    %189 = arith.mulf %188, %187 : vector<2x64xf32>
    %cst_45 = arith.constant 1.000000e+00 : f32
    %190 = vector.broadcast %cst_45 : f32 to vector<2x64xf32>
    %191 = arith.subf %189, %190 : vector<2x64xf32>
    %192 = vector.extract_strided_slice %186 {offsets = [0, 64], sizes = [2, 64], strides = [1, 1]} : vector<2x128xf32> to vector<2x64xf32>
    %193 = arith.mulf %178, %163 : vector<2x64xf32>
    %194 = arith.mulf %177, %191 : vector<2x64xf32>
    %195 = arith.addf %193, %194 : vector<2x64xf32>
    %196 = math.tanh %195 : vector<2x64xf32>
    %197 = arith.mulf %192, %196 : vector<2x64xf32>
    %c6_i32 = arith.constant 6 : i32
    %198 = arith.index_cast %c6_i32 : i32 to index
    %c0_46 = arith.constant 0 : index
    %c0_47 = arith.constant 0 : index
    %199 = vector.load %arg0[%198, %c0_46, %c0_47] : memref<8x2x256xf32, #tpu.memory_space<vmem>>, vector<1x2x256xf32>
    %200 = vector.shape_cast %199 : vector<1x2x256xf32> to vector<2x256xf32>
    %cst_48 = arith.constant dense<0.000000e+00> : vector<2x256xf32>
    %201 = tpu.matmul %197, %0, %cst_48 {dimension_numbers = #tpu.dot_dimension_numbers<[1], [0], [0], [1], [0, 0, 1, 1], [], []>} : vector<2x64xf32>, vector<64x256xf32>, vector<2x256xf32> -> vector<2x256xf32>
    %202 = arith.addf %200, %201 : vector<2x256xf32>
    %203 = vector.extract_strided_slice %202 {offsets = [0, 0], sizes = [2, 128], strides = [1, 1]} : vector<2x256xf32> to vector<2x128xf32>
    %204 = arith.negf %203 : vector<2x128xf32>
    %205 = math.exp %204 : vector<2x128xf32>
    %cst_49 = arith.constant 1.000000e+00 : f32
    %206 = vector.broadcast %cst_49 : f32 to vector<2x128xf32>
    %207 = arith.addf %206, %205 : vector<2x128xf32>
    %208 = arith.divf %206, %207 : vector<2x128xf32>
    %209 = vector.extract_strided_slice %208 {offsets = [0, 0], sizes = [2, 64], strides = [1, 1]} : vector<2x128xf32> to vector<2x64xf32>
    %210 = vector.extract_strided_slice %208 {offsets = [0, 64], sizes = [2, 64], strides = [1, 1]} : vector<2x128xf32> to vector<2x64xf32>
    %211 = vector.extract_strided_slice %202 {offsets = [0, 128], sizes = [2, 128], strides = [1, 1]} : vector<2x256xf32> to vector<2x128xf32>
    %212 = vector.broadcast %3 : vector<1x128xf32> to vector<2x128xf32>
    %213 = arith.mulf %211, %212 : vector<2x128xf32>
    %214 = arith.negf %213 : vector<2x128xf32>
    %215 = math.exp %214 : vector<2x128xf32>
    %cst_50 = arith.constant 1.000000e+00 : f32
    %216 = vector.broadcast %cst_50 : f32 to vector<2x128xf32>
    %217 = arith.addf %216, %215 : vector<2x128xf32>
    %218 = arith.divf %216, %217 : vector<2x128xf32>
    %219 = vector.extract_strided_slice %218 {offsets = [0, 0], sizes = [2, 64], strides = [1, 1]} : vector<2x128xf32> to vector<2x64xf32>
    %cst_51 = arith.constant 2.000000e+00 : f32
    %220 = vector.broadcast %cst_51 : f32 to vector<2x64xf32>
    %221 = arith.mulf %220, %219 : vector<2x64xf32>
    %cst_52 = arith.constant 1.000000e+00 : f32
    %222 = vector.broadcast %cst_52 : f32 to vector<2x64xf32>
    %223 = arith.subf %221, %222 : vector<2x64xf32>
    %224 = vector.extract_strided_slice %218 {offsets = [0, 64], sizes = [2, 64], strides = [1, 1]} : vector<2x128xf32> to vector<2x64xf32>
    %225 = arith.mulf %210, %195 : vector<2x64xf32>
    %226 = arith.mulf %209, %223 : vector<2x64xf32>
    %227 = arith.addf %225, %226 : vector<2x64xf32>
    %228 = math.tanh %227 : vector<2x64xf32>
    %229 = arith.mulf %224, %228 : vector<2x64xf32>
    %c7_i32 = arith.constant 7 : i32
    %230 = arith.index_cast %c7_i32 : i32 to index
    %c0_53 = arith.constant 0 : index
    %c0_54 = arith.constant 0 : index
    %231 = vector.load %arg0[%230, %c0_53, %c0_54] : memref<8x2x256xf32, #tpu.memory_space<vmem>>, vector<1x2x256xf32>
    %232 = vector.shape_cast %231 : vector<1x2x256xf32> to vector<2x256xf32>
    %cst_55 = arith.constant dense<0.000000e+00> : vector<2x256xf32>
    %233 = tpu.matmul %229, %0, %cst_55 {dimension_numbers = #tpu.dot_dimension_numbers<[1], [0], [0], [1], [0, 0, 1, 1], [], []>} : vector<2x64xf32>, vector<64x256xf32>, vector<2x256xf32> -> vector<2x256xf32>
    %234 = arith.addf %232, %233 : vector<2x256xf32>
    %235 = vector.extract_strided_slice %234 {offsets = [0, 0], sizes = [2, 128], strides = [1, 1]} : vector<2x256xf32> to vector<2x128xf32>
    %236 = arith.negf %235 : vector<2x128xf32>
    %237 = math.exp %236 : vector<2x128xf32>
    %cst_56 = arith.constant 1.000000e+00 : f32
    %238 = vector.broadcast %cst_56 : f32 to vector<2x128xf32>
    %239 = arith.addf %238, %237 : vector<2x128xf32>
    %240 = arith.divf %238, %239 : vector<2x128xf32>
    %241 = vector.extract_strided_slice %240 {offsets = [0, 0], sizes = [2, 64], strides = [1, 1]} : vector<2x128xf32> to vector<2x64xf32>
    %242 = vector.extract_strided_slice %240 {offsets = [0, 64], sizes = [2, 64], strides = [1, 1]} : vector<2x128xf32> to vector<2x64xf32>
    %243 = vector.extract_strided_slice %234 {offsets = [0, 128], sizes = [2, 128], strides = [1, 1]} : vector<2x256xf32> to vector<2x128xf32>
    %244 = vector.broadcast %3 : vector<1x128xf32> to vector<2x128xf32>
    %245 = arith.mulf %243, %244 : vector<2x128xf32>
    %246 = arith.negf %245 : vector<2x128xf32>
    %247 = math.exp %246 : vector<2x128xf32>
    %cst_57 = arith.constant 1.000000e+00 : f32
    %248 = vector.broadcast %cst_57 : f32 to vector<2x128xf32>
    %249 = arith.addf %248, %247 : vector<2x128xf32>
    %250 = arith.divf %248, %249 : vector<2x128xf32>
    %251 = vector.extract_strided_slice %250 {offsets = [0, 0], sizes = [2, 64], strides = [1, 1]} : vector<2x128xf32> to vector<2x64xf32>
    %cst_58 = arith.constant 2.000000e+00 : f32
    %252 = vector.broadcast %cst_58 : f32 to vector<2x64xf32>
    %253 = arith.mulf %252, %251 : vector<2x64xf32>
    %cst_59 = arith.constant 1.000000e+00 : f32
    %254 = vector.broadcast %cst_59 : f32 to vector<2x64xf32>
    %255 = arith.subf %253, %254 : vector<2x64xf32>
    %256 = vector.extract_strided_slice %250 {offsets = [0, 64], sizes = [2, 64], strides = [1, 1]} : vector<2x128xf32> to vector<2x64xf32>
    %257 = arith.mulf %242, %227 : vector<2x64xf32>
    %258 = arith.mulf %241, %255 : vector<2x64xf32>
    %259 = arith.addf %257, %258 : vector<2x64xf32>
    %260 = math.tanh %259 : vector<2x64xf32>
    %261 = arith.mulf %256, %260 : vector<2x64xf32>
    %c8_i32 = arith.constant 8 : i32
    %c0_60 = arith.constant 0 : index
    %c0_61 = arith.constant 0 : index
    %262 = vector.load %arg2[%c0_60, %c0_61] : memref<64x128xf32, #tpu.memory_space<vmem>>, vector<64x128xf32>
    %cst_62 = arith.constant dense<0.000000e+00> : vector<2x128xf32>
    %263 = tpu.matmul %261, %262, %cst_62 {dimension_numbers = #tpu.dot_dimension_numbers<[1], [0], [0], [1], [0, 0, 1, 1], [], []>} : vector<2x64xf32>, vector<64x128xf32>, vector<2x128xf32> -> vector<2x128xf32>
    %c0_63 = arith.constant 0 : index
    %c0_64 = arith.constant 0 : index
    %264 = vector.load %arg3[%c0_63, %c0_64] : memref<1x128xf32, #tpu.memory_space<vmem>>, vector<1x128xf32>
    %265 = vector.broadcast %264 : vector<1x128xf32> to vector<2x128xf32>
    %266 = arith.addf %263, %265 : vector<2x128xf32>
    %c0_65 = arith.constant 0 : index
    %c0_66 = arith.constant 0 : index
    %267 = vector.load %arg4[%c0_65, %c0_66] : memref<2x128xf32, #tpu.memory_space<vmem>>, vector<2x128xf32>
    tpu.vector_store %arg4[%c0_65, %c0_66], %266 {strides = array<i32>} : memref<2x128xf32, #tpu.memory_space<vmem>>, vector<2x128xf32>,
    return
  }
}

</mosaic_0001>

<bundles_post_ra>
// kernel: many_to_one_lstm.1
= control target key start
LH: loop header
LB: loop body
LE: loop exit
PB: predicated region body
PF: predicated region fallthrough
CT: control target
= control target key end

     0   :  { %s1467_s0 = inlined_call_operand.vmem [shape: f32[8,2,256], index: 0, kind: input, shape index: {}]   ;;  %s1468_s1 = inlined_call_operand.vmem [shape: f32[64,256], index: 1, kind: input, shape index: {}]   ;;  %s1469_s2 = inlined_call_operand.vmem [shape: f32[64,128], index: 2, kind: input, shape index: {}]   ;;  %s1470_s3 = inlined_call_operand.vmem [shape: f32[1,128], index: 3, kind: input, shape index: {}]   ;;  %s1471_s4 = inlined_call_operand.hbm [shape: f32[2,128], index: 4, kind: output, shape index: {}]  }
   0x1   :  { %v1142_v0 = vld [vmem:[%s1468_s1 + $0x78] sm:$0xff]  ;;  %v1147_v1 = vld [vmem:[%s1468_s1 + $0x70] sm:$0xff]  ;;  %v1152_v2 = vld [vmem:[%s1468_s1 + $0x68] sm:$0xff] }
   0x2   :  { %68 = vmatpush.msra.mxu1 %v1142_v0  ;;  %48 = vmatpush.msra.mxu0 %v1147_v1  ;;  %v1159_v3 = vld [vmem:[%s1468_s1 + $0x60] sm:$0xff]  ;;  %v1164_v4 = vld [vmem:[%s1468_s1 + $0x58] sm:$0xff]  ;;  %v1169_v5 = vld [vmem:[%s1468_s1 + $0x50] sm:$0xff] }
   0x3   :  { %158 = vmatpush.msra.mxu2 %v1147_v1  ;;  %178 = vmatpush.msra.mxu3 %v1142_v0  ;;  %v1178_v6 = vld [vmem:[%s1468_s1 + $0x48] sm:$0xff]  ;;  %v1183_v7 = vld [vmem:[%s1468_s1 + $0x40] sm:$0xff] }
   0x4   :  { %69 = vmatpush.msra.mxu1 %v1152_v2  ;;  %49 = vmatpush.msra.mxu0 %v1159_v3 }
   0x5   :  { %159 = vmatpush.msra.mxu2 %v1159_v3  ;;  %179 = vmatpush.msra.mxu3 %v1152_v2 }
   0x6   :  { %70 = vmatpush.msra.mxu1 %v1164_v4  ;;  %50 = vmatpush.msra.mxu0 %v1169_v5 }
   0x7   :  { %9 = vsyncpa [#allocation3], 0  ;;  %v1192_v8 = vld [vmem:[%s1468_s1 + $0x38] sm:$0xff]  ;;  %v1197_v9 = vld [vmem:[%s1468_s1 + $0x30] sm:$0xff]  ;;  %160 = vmatpush.msra.mxu2 %v1169_v5  ;;  %180 = vmatpush.msra.mxu3 %v1164_v4  ;;  %v1110_v16 = vmov 0.0   ;;  %vm34_vm0 = vcmask 523264  }
   0x8   :  { %71 = vmatpush.msra.mxu1 %v1178_v6  ;;  %51 = vmatpush.msra.mxu0 %v1183_v7  ;;  %v1206_v10 = vld [vmem:[%s1468_s1 + $0x28] sm:$0xff]  ;;  %v1211_v11 = vld [vmem:[%s1468_s1 + $0x20] sm:$0xff]  ;;  %v1220_v12 = vld [vmem:[%s1468_s1 + $0x18] sm:$0xff]  ;;  %vm83_vm1 = vcmask 1041408   ;;  %v1111_v20 = vmov 1.0   ;;  %s1112_s22 = smov 64  }
   0x9   :  { %161 = vmatpush.msra.mxu2 %v1183_v7  ;;  %181 = vmatpush.msra.mxu3 %v1178_v6  ;;  %v1225_v13 = vld [vmem:[%s1468_s1 + $0x10] sm:$0xff]  ;;  %v1234_v14 = vld [vmem:[%s1468_s1 + $0x8] sm:$0xff]  ;;  %v1239_v15 = vld [vmem:[%s1468_s1] sm:$0xff]  ;;  %v35_v21 = vsel %vm34_vm0, 2.0, %v1111_v20  ;;  %s1113_s28 = smov [#allocation2]   ;;  %s944_s5 = sshll.u32 %s1471_s4, 4  ;;  %s945_s5 = int_to_ptr.hbm [resolvable:$true] %s944_s5 }
   0xa   :  { %72 = vmatpush.msra.mxu1 %v1192_v8  ;;  %52 = vmatpush.msra.mxu0 %v1197_v9  ;;  %v36_v22 = vld [vmem:[%s1467_s0] sm:$0xf]  ;;  %v1304_v25 = vperm.slane %v35_v21, 0  ;;  %s942_s29 = sshll.u32 %s1113_s28, 4  ;;  %s943_s29 = int_to_ptr.vmem [resolvable:$true] %s942_s29 }
   0xb   :  { %162 = vmatpush.msra.mxu2 %v1197_v9  ;;  %182 = vmatpush.msra.mxu3 %v1192_v8 }
   0xc   :  { %73 = vmatpush.msra.mxu1 %v1206_v10  ;;  %53 = vmatpush.msra.mxu0 %v1211_v11 }
   0xd   :  { %163 = vmatpush.msra.mxu2 %v1211_v11  ;;  %183 = vmatpush.msra.mxu3 %v1206_v10 }
   0xe   :  { %74 = vmatpush.msra.mxu1 %v1220_v12  ;;  %54 = vmatpush.msra.mxu0 %v1225_v13 }
   0xf   :  { %164 = vmatpush.msra.mxu2 %v1225_v13  ;;  %184 = vmatpush.msra.mxu3 %v1220_v12 }
  0x10   :  { %75 = vmatpush.msra.mxu1 %v1234_v14  ;;  %55 = vmatpush.msra.mxu0 %v1239_v15 }
  0x11   :  { %76 = vmatmul.f32.vlgmr.msra.gmra.mxu1 %v1110_v16  ;;  %56 = vmatmul.f32.vlgmr.msra.gmra.mxu0 %v1110_v16 }
  0x12   :  { %165 = vmatpush.msra.mxu2 %v1239_v15  ;;  %185 = vmatpush.msra.mxu3 %v1234_v14 }
  0x13   :  { %266 = vmatpush.msrb.mxu0 %v1147_v1  ;;  %286 = vmatpush.msrb.mxu1 %v1142_v0 }
  0x14   :  { %374 = vmatpush.msrb.mxu2 %v1147_v1  ;;  %394 = vmatpush.msrb.mxu3 %v1142_v0 }
  0x15   :  { %267 = vmatpush.msrb.mxu0 %v1159_v3  ;;  %287 = vmatpush.msrb.mxu1 %v1152_v2 }
  0x16   :  { %375 = vmatpush.msrb.mxu2 %v1159_v3  ;;  %395 = vmatpush.msrb.mxu3 %v1152_v2 }
  0x17   :  { %268 = vmatpush.msrb.mxu0 %v1169_v5  ;;  %288 = vmatpush.msrb.mxu1 %v1164_v4 }
  0x18   :  { %376 = vmatpush.msrb.mxu2 %v1169_v5  ;;  %396 = vmatpush.msrb.mxu3 %v1164_v4 }
  0x19   :  { %269 = vmatpush.msrb.mxu0 %v1183_v7  ;;  %289 = vmatpush.msrb.mxu1 %v1178_v6 }
  0x1a   :  { %377 = vmatpush.msrb.mxu2 %v1183_v7  ;;  %397 = vmatpush.msrb.mxu3 %v1178_v6 }
  0x1b   :  { %270 = vmatpush.msrb.mxu0 %v1197_v9  ;;  %290 = vmatpush.msrb.mxu1 %v1192_v8 }
  0x1c   :  { %378 = vmatpush.msrb.mxu2 %v1197_v9  ;;  %398 = vmatpush.msrb.mxu3 %v1192_v8 }
  0x1d   :  { %271 = vmatpush.msrb.mxu0 %v1211_v11  ;;  %291 = vmatpush.msrb.mxu1 %v1206_v10 }
  0x1e   :  { %379 = vmatpush.msrb.mxu2 %v1211_v11  ;;  %399 = vmatpush.msrb.mxu3 %v1206_v10 }
  0x1f   :  { %272 = vmatpush.msrb.mxu0 %v1225_v13  ;;  %292 = vmatpush.msrb.mxu1 %v1220_v12 }
  0x20   :  { %380 = vmatpush.msrb.mxu2 %v1225_v13  ;;  %400 = vmatpush.msrb.mxu3 %v1220_v12 }
  0x21   :  { %273 = vmatpush.msrb.mxu0 %v1239_v15  ;;  %293 = vmatpush.msrb.mxu1 %v1234_v14 }
  0x22   :  { %381 = vmatpush.msrb.mxu2 %v1239_v15  ;;  %401 = vmatpush.msrb.mxu3 %v1234_v14 }
  0x23   :  { %482 = vmatpush.msra.mxu0 %v1147_v1  ;;  %502 = vmatpush.msra.mxu1 %v1142_v0 }
  0x25   :  { %483 = vmatpush.msra.mxu0 %v1159_v3  ;;  %503 = vmatpush.msra.mxu1 %v1152_v2 }
  0x27   :  { %484 = vmatpush.msra.mxu0 %v1169_v5  ;;  %504 = vmatpush.msra.mxu1 %v1164_v4 }
  0x29   :  { %485 = vmatpush.msra.mxu0 %v1183_v7  ;;  %505 = vmatpush.msra.mxu1 %v1178_v6 }
  0x2b   :  { %486 = vmatpush.msra.mxu0 %v1197_v9  ;;  %506 = vmatpush.msra.mxu1 %v1192_v8 }
  0x2d   :  { %487 = vmatpush.msra.mxu0 %v1211_v11  ;;  %507 = vmatpush.msra.mxu1 %v1206_v10 }
  0x2f   :  { %488 = vmatpush.msra.mxu0 %v1225_v13  ;;  %508 = vmatpush.msra.mxu1 %v1220_v12 }
  0x31   :  { %489 = vmatpush.msra.mxu0 %v1239_v15  ;;  %509 = vmatpush.msra.mxu1 %v1234_v14 }
  0x8e   :  { %v77_v17 = vpop.f32.mrf.mxu1  ;;  %v57_v18 = vpop.f32.mrf.mxu0 }
  0x8f   :  { %v82_v19 = vrot.slane %v77_v17, 6  ;;  %v956_v17 = vld [vmem:[%s1467_s0 + $0x4] sm:$0xf] }
  0x91   :  { %v84_v23 = vsel %vm83_vm1, %v57_v18, %v82_v19 }
  0x92   :  { %v86_v24 = vadd.f32 %v84_v23, %v36_v22 }
  0x94   :  { %v953_v26 = vmul.f32 -1.442695, %v86_v24  ;;  %v108_v27 = vrot.slane %v86_v24, 2 }
  0x96   :  { %1004 = vpow2.f32 %v953_v26  ;;  %v110_v28 = vmul.f32 %v108_v27, %v1304_v25 }
  0x98   :  { %v954_v29 = vmul.f32 -1.442695, %v110_v28 }
  0x9a   :  { %1006 = vpow2.f32 %v954_v29 }
  0x9c   :  { %v1005_v30 = vpop.eup %1004 }
  0x9d   :  { %v90_v31 = vadd.f32 1.0, %v1005_v30 }
  0x9f   :  { %1008 = vrcp.f32 %v90_v31  ;;  %v102_v46 = vand.u32 2147483648, %v90_v31  ;;  %vm96_vm6 = vweird.f32 %v90_v31  ;;  %v100_v48 = vand.u32 2147483647, %v90_v31 }
  0xa0   :  { %v1007_v32 = vpop.eup %1006 }
  0xa1   :  { %v114_v33 = vadd.f32 1.0, %v1007_v32  ;;  %v103_v53 = vor.u32 1.1754944e-38, %v102_v46  ;;  %vm101_vm9 = vcmp.eq.f32.partialorder %v100_v48, 8.507059e+37 }
  0xa3   :  { %1010 = vrcp.f32 %v114_v33  ;;  %v126_v41 = vand.u32 2147483648, %v114_v33  ;;  %v124_v43 = vand.u32 2147483647, %v114_v33  ;;  %vm120_vm4 = vweird.f32 %v114_v33 }
  0xa5   :  { %v1009_v34 = vpop.eup %1008  ;;  %v127_v47 = vor.u32 1.1754944e-38, %v126_v41  ;;  %vm125_vm7 = vcmp.eq.f32.partialorder %v124_v43, 8.507059e+37 }
  0xa6   :  { %v92_v35 = vmul.f32 %v1009_v34, %v90_v31  ;;  %vm97_vm3 = vweird.f32 %v1009_v34 }
  0xa7   :  { %vm98_vm8 = vmor %vm96_vm6, %vm97_vm3 }
  0xa8   :  { %v93_v36 = vsub.f32 1.0, %v92_v35 }
  0xa9   :  { %v1011_v37 = vpop.eup %1010 }
  0xaa   :  { %v116_v38 = vmul.f32 %v1011_v37, %v114_v33  ;;  %v94_v39 = vmul.f32 %v1009_v34, %v93_v36  ;;  %vm121_vm2 = vweird.f32 %v1011_v37 }
  0xab   :  { %vm122_vm5 = vmor %vm120_vm4, %vm121_vm2 }
  0xac   :  { %v117_v40 = vsub.f32 1.0, %v116_v38  ;;  %v95_v44 = vadd.f32 %v1009_v34, %v94_v39 }
  0xae   :  { %v118_v42 = vmul.f32 %v1011_v37, %v117_v40  ;;  %v99_v51 = vsel %vm98_vm8, %v1009_v34, %v95_v44 }
  0xaf   :  { %v104_v55 = vsel %vm101_vm9, %v103_v53, %v99_v51 }
  0xb0   :  { %v119_v45 = vadd.f32 %v1011_v37, %v118_v42  ;;  %v132_v57 = vmul.f32 0.0, %v104_v55 }
  0xb2   :  { %v123_v49 = vsel %vm122_vm5, %v1011_v37, %v119_v45 }
  0xb3   :  { %v128_v50 = vsel %vm125_vm7, %v127_v47, %v123_v49 }
  0xb4   :  { %v130_v52 = vmul.f32 2.0, %v128_v50 }
  0xb6   :  { %v955_v54 = vadd.f32 -1.0, %v130_v52 }
  0xb8   :  { %v133_v56 = vmul.f32 %v955_v54, %v104_v55 }
  0xba   :  { %135 = vrot.lane.b32.xlu0 %v133_v56, %s1112_s22 }
 0x12c   :  { %v136_v58 = vpop.permute.xlu0 %135 }
 0x12d   :  { %v1308_v59 = vadd.f32 %v136_v58, %v132_v57 }
 0x12f   :  { %1012 = vtanh.f32 %v1308_v59 }
 0x135   :  { %v1013_v60 = vpop.eup %1012 }
 0x136   :  { %v140_v61 = vmul.f32 %v1013_v60, %v128_v50 }
 0x138   :  { %144 = vst [vmem:[#allocation1] ss:$4 sm:$0xff] %v140_v61 }
 0x13f   :  { %v145_v62 = vld.sshfl [vmem:[#allocation1] sm:$0xff pattern:$0x73625140] }
 0x140   :  { %146 = vrot.lane.b32.xlu0 %v145_v62, %s1112_s22  ;;  %v962_v62 = vld [vmem:[%s1467_s0 + $0x8] sm:$0xf] }
 0x1b2   :  { %v147_v63 = vpop.permute.xlu0 %146 }
 0x1b3   :  { %957 = vmatmul.msk.f32.vlgmr.msra.gmra.mxu2 %vm34_vm0, %v147_v63  ;;  %958 = vmatmul.msk.f32.vlgmr.msra.gmra.mxu3 %vm34_vm0, %v147_v63 }
 0x1b4   :  { %590 = vmatpush.msra.mxu2 %v1147_v1  ;;  %610 = vmatpush.msra.mxu3 %v1142_v0 }
 0x1b6   :  { %591 = vmatpush.msra.mxu2 %v1159_v3  ;;  %611 = vmatpush.msra.mxu3 %v1152_v2 }
 0x1b8   :  { %592 = vmatpush.msra.mxu2 %v1169_v5  ;;  %612 = vmatpush.msra.mxu3 %v1164_v4 }
 0x1ba   :  { %593 = vmatpush.msra.mxu2 %v1183_v7  ;;  %613 = vmatpush.msra.mxu3 %v1178_v6 }
 0x1bc   :  { %594 = vmatpush.msra.mxu2 %v1197_v9  ;;  %614 = vmatpush.msra.mxu3 %v1192_v8 }
 0x1be   :  { %595 = vmatpush.msra.mxu2 %v1211_v11  ;;  %615 = vmatpush.msra.mxu3 %v1206_v10 }
 0x1c0   :  { %596 = vmatpush.msra.mxu2 %v1225_v13  ;;  %616 = vmatpush.msra.mxu3 %v1220_v12 }
 0x1c2   :  { %597 = vmatpush.msra.mxu2 %v1239_v15  ;;  %617 = vmatpush.msra.mxu3 %v1234_v14 }
 0x236   :  { %v187_v16 = vpop.f32.mrf.mxu3  ;;  %v167_v19 = vpop.f32.mrf.mxu2 }
 0x237   :  { %v192_v18 = vrot.slane %v187_v16, 6 }
 0x239   :  { %v193_v20 = vsel %vm83_vm1, %v167_v19, %v192_v18 }
 0x23a   :  { %v195_v21 = vadd.f32 %v956_v17, %v193_v20 }
 0x23c   :  { %v959_v22 = vmul.f32 -1.442695, %v195_v21  ;;  %v216_v23 = vrot.slane %v195_v21, 2 }
 0x23e   :  { %1014 = vpow2.f32 %v959_v22  ;;  %v218_v24 = vmul.f32 %v216_v23, %v1304_v25 }
 0x240   :  { %v960_v26 = vmul.f32 -1.442695, %v218_v24 }
 0x242   :  { %1016 = vpow2.f32 %v960_v26 }
 0x244   :  { %v1015_v27 = vpop.eup %1014 }
 0x245   :  { %v199_v28 = vadd.f32 1.0, %v1015_v27 }
 0x247   :  { %1018 = vrcp.f32 %v199_v28  ;;  %v211_v43 = vand.u32 2147483648, %v199_v28  ;;  %vm205_vm14 = vweird.f32 %v199_v28  ;;  %v209_v45 = vand.u32 2147483647, %v199_v28 }
 0x248   :  { %v1017_v29 = vpop.eup %1016 }
 0x249   :  { %v222_v30 = vadd.f32 1.0, %v1017_v29  ;;  %v212_v50 = vor.u32 1.1754944e-38, %v211_v43  ;;  %vm210_vm3 = vcmp.eq.f32.partialorder %v209_v45, 8.507059e+37 }
 0x24b   :  { %1020 = vrcp.f32 %v222_v30  ;;  %v234_v38 = vand.u32 2147483648, %v222_v30  ;;  %v232_v40 = vand.u32 2147483647, %v222_v30  ;;  %vm228_vm12 = vweird.f32 %v222_v30 }
 0x24d   :  { %v1019_v31 = vpop.eup %1018  ;;  %v235_v44 = vor.u32 1.1754944e-38, %v234_v38  ;;  %vm233_vm15 = vcmp.eq.f32.partialorder %v232_v40, 8.507059e+37 }
 0x24e   :  { %v201_v32 = vmul.f32 %v1019_v31, %v199_v28  ;;  %vm206_vm11 = vweird.f32 %v1019_v31 }
 0x24f   :  { %vm207_vm2 = vmor %vm205_vm14, %vm206_vm11 }
 0x250   :  { %v202_v33 = vsub.f32 1.0, %v201_v32 }
 0x251   :  { %v1021_v34 = vpop.eup %1020 }
 0x252   :  { %v224_v35 = vmul.f32 %v1021_v34, %v222_v30  ;;  %v203_v36 = vmul.f32 %v1019_v31, %v202_v33  ;;  %vm229_vm10 = vweird.f32 %v1021_v34 }
 0x253   :  { %vm230_vm13 = vmor %vm228_vm12, %vm229_vm10 }
 0x254   :  { %v225_v37 = vsub.f32 1.0, %v224_v35  ;;  %v204_v41 = vadd.f32 %v1019_v31, %v203_v36 }
 0x256   :  { %v226_v39 = vmul.f32 %v1021_v34, %v225_v37  ;;  %v208_v48 = vsel %vm207_vm2, %v1019_v31, %v204_v41 }
 0x257   :  { %v213_v52 = vsel %vm210_vm3, %v212_v50, %v208_v48 }
 0x258   :  { %v227_v42 = vadd.f32 %v1021_v34, %v226_v39  ;;  %v240_v54 = vmul.f32 %v213_v52, %v1308_v59 }
 0x25a   :  { %v231_v46 = vsel %vm230_vm13, %v1021_v34, %v227_v42 }
 0x25b   :  { %v236_v47 = vsel %vm233_vm15, %v235_v44, %v231_v46 }
 0x25c   :  { %v238_v49 = vmul.f32 2.0, %v236_v47 }
 0x25e   :  { %v961_v51 = vadd.f32 -1.0, %v238_v49 }
 0x260   :  { %v241_v53 = vmul.f32 %v961_v51, %v213_v52 }
 0x262   :  { %243 = vrot.lane.b32.xlu1 %v241_v53, %s1112_s22 }
 0x2d4   :  { %v244_v55 = vpop.permute.xlu1 %243 }
 0x2d5   :  { %v1337_v56 = vadd.f32 %v244_v55, %v240_v54 }
 0x2d7   :  { %1022 = vtanh.f32 %v1337_v56 }
 0x2dd   :  { %v1023_v57 = vpop.eup %1022 }
 0x2de   :  { %v248_v58 = vmul.f32 %v1023_v57, %v236_v47 }
 0x2e0   :  { %252 = vst [vmem:[#allocation1] ss:$4 sm:$0xff] %v248_v58 }
 0x2e7   :  { %v253_v60 = vld.sshfl [vmem:[#allocation1] sm:$0xff pattern:$0x73625140] }
 0x2e8   :  { %254 = vrot.lane.b32.xlu1 %v253_v60, %s1112_s22 }
 0x35a   :  { %v255_v61 = vpop.permute.xlu1 %254 }
 0x35b   :  { %963 = vmatmul.msk.f32.vlgmr.msrb.gmra.mxu0 %vm34_vm0, %v255_v61  ;;  %964 = vmatmul.msk.f32.vlgmr.msrb.gmra.mxu1 %vm34_vm0, %v255_v61 }
 0x35c   :  { %698 = vmatpush.msrb.mxu0 %v1147_v1  ;;  %718 = vmatpush.msrb.mxu1 %v1142_v0 }
 0x35e   :  { %699 = vmatpush.msrb.mxu0 %v1159_v3  ;;  %719 = vmatpush.msrb.mxu1 %v1152_v2 }
 0x360   :  { %700 = vmatpush.msrb.mxu0 %v1169_v5  ;;  %720 = vmatpush.msrb.mxu1 %v1164_v4 }
 0x362   :  { %701 = vmatpush.msrb.mxu0 %v1183_v7  ;;  %721 = vmatpush.msrb.mxu1 %v1178_v6 }
 0x364   :  { %702 = vmatpush.msrb.mxu0 %v1197_v9  ;;  %722 = vmatpush.msrb.mxu1 %v1192_v8 }
 0x366   :  { %703 = vmatpush.msrb.mxu0 %v1211_v11  ;;  %723 = vmatpush.msrb.mxu1 %v1206_v10 }
 0x368   :  { %704 = vmatpush.msrb.mxu0 %v1225_v13  ;;  %724 = vmatpush.msrb.mxu1 %v1220_v12 }
 0x36a   :  { %705 = vmatpush.msrb.mxu0 %v1239_v15  ;;  %725 = vmatpush.msrb.mxu1 %v1234_v14 }
 0x3d8   :  { %v295_v59 = vpop.f32.mrf.mxu1  ;;  %v275_v16 = vpop.f32.mrf.mxu0 }
 0x3d9   :  { %v300_v63 = vrot.slane %v295_v59, 6 }
 0x3db   :  { %v301_v17 = vsel %vm83_vm1, %v275_v16, %v300_v63 }
 0x3dc   :  { %v303_v18 = vadd.f32 %v962_v62, %v301_v17 }
 0x3de   :  { %v965_v19 = vmul.f32 -1.442695, %v303_v18  ;;  %v324_v20 = vrot.slane %v303_v18, 2 }
 0x3e0   :  { %1024 = vpow2.f32 %v965_v19  ;;  %v326_v21 = vmul.f32 %v324_v20, %v1304_v25 }
 0x3e2   :  { %v966_v22 = vmul.f32 -1.442695, %v326_v21 }
 0x3e4   :  { %1026 = vpow2.f32 %v966_v22 }
 0x3e6   :  { %v1025_v23 = vpop.eup %1024 }
 0x3e7   :  { %v307_v24 = vadd.f32 1.0, %v1025_v23 }
 0x3e9   :  { %1028 = vrcp.f32 %v307_v24  ;;  %v319_v40 = vand.u32 2147483648, %v307_v24  ;;  %vm313_vm8 = vweird.f32 %v307_v24  ;;  %v317_v42 = vand.u32 2147483647, %v307_v24 }
 0x3ea   :  { %v1027_v26 = vpop.eup %1026 }
 0x3eb   :  { %v330_v27 = vadd.f32 1.0, %v1027_v26  ;;  %v320_v47 = vor.u32 1.1754944e-38, %v319_v40  ;;  %vm318_vm11 = vcmp.eq.f32.partialorder %v317_v42, 8.507059e+37  ;;  %v974_v40 = vld [vmem:[%s1467_s0 + $0x10] sm:$0xf] }
 0x3ed   :  { %1030 = vrcp.f32 %v330_v27  ;;  %v342_v35 = vand.u32 2147483648, %v330_v27  ;;  %v340_v37 = vand.u32 2147483647, %v330_v27  ;;  %vm336_vm6 = vweird.f32 %v330_v27 }
 0x3ef   :  { %v1029_v28 = vpop.eup %1028  ;;  %v343_v41 = vor.u32 1.1754944e-38, %v342_v35  ;;  %vm341_vm9 = vcmp.eq.f32.partialorder %v340_v37, 8.507059e+37 }
 0x3f0   :  { %v309_v29 = vmul.f32 %v1029_v28, %v307_v24  ;;  %vm314_vm5 = vweird.f32 %v1029_v28 }
 0x3f1   :  { %vm315_vm10 = vmor %vm313_vm8, %vm314_vm5 }
 0x3f2   :  { %v310_v30 = vsub.f32 1.0, %v309_v29 }
 0x3f3   :  { %v1031_v31 = vpop.eup %1030 }
 0x3f4   :  { %v332_v32 = vmul.f32 %v1031_v31, %v330_v27  ;;  %v311_v33 = vmul.f32 %v1029_v28, %v310_v30  ;;  %vm337_vm4 = vweird.f32 %v1031_v31 }
 0x3f5   :  { %vm338_vm7 = vmor %vm336_vm6, %vm337_vm4 }
 0x3f6   :  { %v333_v34 = vsub.f32 1.0, %v332_v32  ;;  %v312_v38 = vadd.f32 %v1029_v28, %v311_v33 }
 0x3f8   :  { %v334_v36 = vmul.f32 %v1031_v31, %v333_v34  ;;  %v316_v45 = vsel %vm315_vm10, %v1029_v28, %v312_v38 }
 0x3f9   :  { %v321_v49 = vsel %vm318_vm11, %v320_v47, %v316_v45 }
 0x3fa   :  { %v335_v39 = vadd.f32 %v1031_v31, %v334_v36  ;;  %v348_v51 = vmul.f32 %v321_v49, %v1337_v56 }
 0x3fc   :  { %v339_v43 = vsel %vm338_vm7, %v1031_v31, %v335_v39 }
 0x3fd   :  { %v344_v44 = vsel %vm341_vm9, %v343_v41, %v339_v43 }
 0x3fe   :  { %v346_v46 = vmul.f32 2.0, %v344_v44 }
 0x400   :  { %v967_v48 = vadd.f32 -1.0, %v346_v46 }
 0x402   :  { %v349_v50 = vmul.f32 %v967_v48, %v321_v49 }
 0x404   :  { %351 = vrot.lane.b32.xlu2 %v349_v50, %s1112_s22 }
 0x45e   :  { %v352_v52 = vpop.permute.xlu2 %351 }
 0x45f   :  { %v1366_v53 = vadd.f32 %v352_v52, %v348_v51 }
 0x461   :  { %1032 = vtanh.f32 %v1366_v53 }
 0x467   :  { %v1033_v54 = vpop.eup %1032 }
 0x468   :  { %v356_v55 = vmul.f32 %v1033_v54, %v344_v44 }
 0x46a   :  { %360 = vst [vmem:[#allocation1] ss:$4 sm:$0xff] %v356_v55 }
 0x471   :  { %v361_v57 = vld.sshfl [vmem:[#allocation1] sm:$0xff pattern:$0x73625140] }
 0x472   :  { %362 = vrot.lane.b32.xlu2 %v361_v57, %s1112_s22 }
 0x4cc   :  { %v363_v58 = vpop.permute.xlu2 %362 }
 0x4cd   :  { %969 = vmatmul.msk.f32.vlgmr.msrb.gmra.mxu2 %vm34_vm0, %v363_v58  ;;  %970 = vmatmul.msk.f32.vlgmr.msrb.gmra.mxu3 %vm34_vm0, %v363_v58 }
 0x4ce   :  { %806 = vmatpush.msrb.mxu2 %v1147_v1  ;;  %826 = vmatpush.msrb.mxu3 %v1142_v0  ;;  %v968_v1 = vld [vmem:[%s1467_s0 + $0xc] sm:$0xf] }
 0x4d0   :  { %807 = vmatpush.msrb.mxu2 %v1159_v3  ;;  %827 = vmatpush.msrb.mxu3 %v1152_v2 }
 0x4d2   :  { %808 = vmatpush.msrb.mxu2 %v1169_v5  ;;  %828 = vmatpush.msrb.mxu3 %v1164_v4 }
 0x4d4   :  { %809 = vmatpush.msrb.mxu2 %v1183_v7  ;;  %829 = vmatpush.msrb.mxu3 %v1178_v6 }
 0x4d6   :  { %810 = vmatpush.msrb.mxu2 %v1197_v9  ;;  %830 = vmatpush.msrb.mxu3 %v1192_v8 }
 0x4d8   :  { %811 = vmatpush.msrb.mxu2 %v1211_v11  ;;  %831 = vmatpush.msrb.mxu3 %v1206_v10 }
 0x4da   :  { %812 = vmatpush.msrb.mxu2 %v1225_v13  ;;  %832 = vmatpush.msrb.mxu3 %v1220_v12 }
 0x4dc   :  { %813 = vmatpush.msrb.mxu2 %v1239_v15  ;;  %833 = vmatpush.msrb.mxu3 %v1234_v14 }
 0x550   :  { %v403_v0 = vpop.f32.mrf.mxu3  ;;  %v383_v3 = vpop.f32.mrf.mxu2 }
 0x551   :  { %v408_v2 = vrot.slane %v403_v0, 6 }
 0x553   :  { %v409_v4 = vsel %vm83_vm1, %v383_v3, %v408_v2 }
 0x554   :  { %v411_v5 = vadd.f32 %v968_v1, %v409_v4 }
 0x556   :  { %v971_v6 = vmul.f32 -1.442695, %v411_v5  ;;  %v432_v7 = vrot.slane %v411_v5, 2 }
 0x558   :  { %1034 = vpow2.f32 %v971_v6  ;;  %v434_v8 = vmul.f32 %v432_v7, %v1304_v25 }
 0x55a   :  { %v972_v9 = vmul.f32 -1.442695, %v434_v8 }
 0x55c   :  { %1036 = vpow2.f32 %v972_v9 }
 0x55e   :  { %v1035_v10 = vpop.eup %1034 }
 0x55f   :  { %v415_v11 = vadd.f32 1.0, %v1035_v10 }
 0x561   :  { %1038 = vrcp.f32 %v415_v11  ;;  %v427_v20 = vand.u32 2147483648, %v415_v11  ;;  %vm421_vm2 = vweird.f32 %v415_v11  ;;  %v425_v22 = vand.u32 2147483647, %v415_v11 }
 0x562   :  { %v1037_v12 = vpop.eup %1036 }
 0x563   :  { %v438_v13 = vadd.f32 1.0, %v1037_v12  ;;  %v428_v28 = vor.u32 1.1754944e-38, %v427_v20  ;;  %vm426_vm5 = vcmp.eq.f32.partialorder %v425_v22, 8.507059e+37  ;;  %v980_v20 = vld [vmem:[%s1467_s0 + $0x14] sm:$0xf] }
 0x565   :  { %1040 = vrcp.f32 %v438_v13  ;;  %v450_v63 = vand.u32 2147483648, %v438_v13  ;;  %v448_v17 = vand.u32 2147483647, %v438_v13  ;;  %vm444_vm14 = vweird.f32 %v438_v13 }
 0x567   :  { %v1039_v14 = vpop.eup %1038  ;;  %v451_v21 = vor.u32 1.1754944e-38, %v450_v63  ;;  %vm449_vm3 = vcmp.eq.f32.partialorder %v448_v17, 8.507059e+37 }
 0x568   :  { %v417_v15 = vmul.f32 %v1039_v14, %v415_v11  ;;  %vm422_vm13 = vweird.f32 %v1039_v14 }
 0x569   :  { %vm423_vm4 = vmor %vm421_vm2, %vm422_vm13 }
 0x56a   :  { %v418_v56 = vsub.f32 1.0, %v417_v15 }
 0x56b   :  { %v1041_v60 = vpop.eup %1040 }
 0x56c   :  { %v440_v61 = vmul.f32 %v1041_v60, %v438_v13  ;;  %v419_v59 = vmul.f32 %v1039_v14, %v418_v56  ;;  %vm445_vm12 = vweird.f32 %v1041_v60 }
 0x56d   :  { %vm446_vm15 = vmor %vm444_vm14, %vm445_vm12 }
 0x56e   :  { %v441_v62 = vsub.f32 1.0, %v440_v61  ;;  %v420_v18 = vadd.f32 %v1039_v14, %v419_v59 }
 0x570   :  { %v442_v16 = vmul.f32 %v1041_v60, %v441_v62  ;;  %v424_v26 = vsel %vm423_vm4, %v1039_v14, %v420_v18 }
 0x571   :  { %v429_v30 = vsel %vm426_vm5, %v428_v28, %v424_v26 }
 0x572   :  { %v443_v19 = vadd.f32 %v1041_v60, %v442_v16  ;;  %v456_v32 = vmul.f32 %v429_v30, %v1366_v53 }
 0x574   :  { %v447_v23 = vsel %vm446_vm15, %v1041_v60, %v443_v19 }
 0x575   :  { %v452_v24 = vsel %vm449_vm3, %v451_v21, %v447_v23 }
 0x576   :  { %v454_v27 = vmul.f32 2.0, %v452_v24 }
 0x578   :  { %v973_v29 = vadd.f32 -1.0, %v454_v27 }
 0x57a   :  { %v457_v31 = vmul.f32 %v973_v29, %v429_v30 }
 0x57c   :  { %459 = vrot.lane.b32.xlu0 %v457_v31, %s1112_s22 }
 0x5ee   :  { %v460_v33 = vpop.permute.xlu0 %459 }
 0x5ef   :  { %v462_v34 = vadd.f32 %v460_v33, %v456_v32 }
 0x5f1   :  { %1042 = vtanh.f32 %v462_v34 }
 0x5f7   :  { %v1043_v35 = vpop.eup %1042 }
 0x5f8   :  { %v464_v36 = vmul.f32 %v1043_v35, %v452_v24 }
 0x5fa   :  { %468 = vst [vmem:[#allocation1] ss:$4 sm:$0xff] %v464_v36 }
 0x601   :  { %v469_v37 = vld.sshfl [vmem:[#allocation1] sm:$0xff pattern:$0x73625140] }
 0x602   :  { %470 = vrot.lane.b32.xlu1 %v469_v37, %s1112_s22 }
 0x674   :  { %v471_v38 = vpop.permute.xlu1 %470 }
 0x675   :  { %975 = vmatmul.msk.f32.vlgmr.msra.gmra.mxu0 %vm34_vm0, %v471_v38  ;;  %976 = vmatmul.msk.f32.vlgmr.msra.gmra.mxu1 %vm34_vm0, %v471_v38 }
 0x6f2   :  { %v511_v39 = vpop.f32.mrf.mxu1  ;;  %v491_v42 = vpop.f32.mrf.mxu0 }
 0x6f3   :  { %v516_v41 = vrot.slane %v511_v39, 6 }
 0x6f5   :  { %v517_v43 = vsel %vm83_vm1, %v491_v42, %v516_v41 }
 0x6f6   :  { %v519_v44 = vadd.f32 %v974_v40, %v517_v43 }
 0x6f8   :  { %v977_v45 = vmul.f32 -1.442695, %v519_v44  ;;  %v540_v46 = vrot.slane %v519_v44, 2 }
 0x6fa   :  { %1044 = vpow2.f32 %v977_v45  ;;  %v542_v47 = vmul.f32 %v540_v46, %v1304_v25 }
 0x6fc   :  { %v978_v48 = vmul.f32 -1.442695, %v542_v47 }
 0x6fe   :  { %1046 = vpow2.f32 %v978_v48 }
 0x700   :  { %v1045_v49 = vpop.eup %1044 }
 0x701   :  { %v523_v50 = vadd.f32 1.0, %v1045_v49 }
 0x703   :  { %1048 = vrcp.f32 %v523_v50  ;;  %v535_v7 = vand.u32 2147483648, %v523_v50  ;;  %vm529_vm10 = vweird.f32 %v523_v50  ;;  %v533_v9 = vand.u32 2147483647, %v523_v50 }
 0x704   :  { %v1047_v51 = vpop.eup %1046 }
 0x705   :  { %v546_v52 = vadd.f32 1.0, %v1047_v51  ;;  %v536_v14 = vor.u32 1.1754944e-38, %v535_v7  ;;  %vm534_vm13 = vcmp.eq.f32.partialorder %v533_v9, 8.507059e+37  ;;  %v986_v7 = vld [vmem:[%s1467_s0 + $0x18] sm:$0xf] }
 0x707   :  { %1050 = vrcp.f32 %v546_v52  ;;  %v558_v2 = vand.u32 2147483648, %v546_v52  ;;  %v556_v4 = vand.u32 2147483647, %v546_v52  ;;  %vm552_vm8 = vweird.f32 %v546_v52 }
 0x709   :  { %v1049_v53 = vpop.eup %1048  ;;  %v559_v8 = vor.u32 1.1754944e-38, %v558_v2  ;;  %vm557_vm11 = vcmp.eq.f32.partialorder %v556_v4, 8.507059e+37 }
 0x70a   :  { %v525_v54 = vmul.f32 %v1049_v53, %v523_v50  ;;  %vm530_vm7 = vweird.f32 %v1049_v53 }
 0x70b   :  { %vm531_vm12 = vmor %vm529_vm10, %vm530_vm7 }
 0x70c   :  { %v526_v55 = vsub.f32 1.0, %v525_v54 }
 0x70d   :  { %v1051_v57 = vpop.eup %1050 }
 0x70e   :  { %v548_v58 = vmul.f32 %v1051_v57, %v546_v52  ;;  %v527_v0 = vmul.f32 %v1049_v53, %v526_v55  ;;  %vm553_vm6 = vweird.f32 %v1051_v57 }
 0x70f   :  { %vm554_vm9 = vmor %vm552_vm8, %vm553_vm6 }
 0x710   :  { %v549_v1 = vsub.f32 1.0, %v548_v58  ;;  %v528_v5 = vadd.f32 %v1049_v53, %v527_v0 }
 0x712   :  { %v550_v3 = vmul.f32 %v1051_v57, %v549_v1  ;;  %v532_v12 = vsel %vm531_vm12, %v1049_v53, %v528_v5 }
 0x713   :  { %v537_v56 = vsel %vm534_vm13, %v536_v14, %v532_v12 }
 0x714   :  { %v551_v6 = vadd.f32 %v1051_v57, %v550_v3  ;;  %v564_v61 = vmul.f32 %v537_v56, %v462_v34 }
 0x716   :  { %v555_v10 = vsel %vm554_vm9, %v1051_v57, %v551_v6 }
 0x717   :  { %v560_v11 = vsel %vm557_vm11, %v559_v8, %v555_v10 }
 0x718   :  { %v562_v13 = vmul.f32 2.0, %v560_v11 }
 0x71a   :  { %v979_v15 = vadd.f32 -1.0, %v562_v13 }
 0x71c   :  { %v565_v60 = vmul.f32 %v979_v15, %v537_v56 }
 0x71e   :  { %567 = vrot.lane.b32.xlu2 %v565_v60, %s1112_s22 }
 0x778   :  { %v568_v59 = vpop.permute.xlu2 %567 }
 0x779   :  { %v570_v62 = vadd.f32 %v568_v59, %v564_v61 }
 0x77b   :  { %1052 = vtanh.f32 %v570_v62 }
 0x781   :  { %v1053_v63 = vpop.eup %1052 }
 0x782   :  { %v572_v16 = vmul.f32 %v1053_v63, %v560_v11 }
 0x784   :  { %576 = vst [vmem:[#allocation1] ss:$4 sm:$0xff] %v572_v16 }
 0x78b   :  { %v577_v17 = vld.sshfl [vmem:[#allocation1] sm:$0xff pattern:$0x73625140] }
 0x78c   :  { %578 = vrot.lane.b32.xlu0 %v577_v17, %s1112_s22 }
 0x7fe   :  { %v579_v18 = vpop.permute.xlu0 %578 }
 0x7ff   :  { %981 = vmatmul.msk.f32.vlgmr.msra.gmra.mxu2 %vm34_vm0, %v579_v18  ;;  %982 = vmatmul.msk.f32.vlgmr.msra.gmra.mxu3 %vm34_vm0, %v579_v18 }
 0x882   :  { %v619_v19 = vpop.f32.mrf.mxu3  ;;  %v599_v22 = vpop.f32.mrf.mxu2 }
 0x883   :  { %v624_v21 = vrot.slane %v619_v19, 6 }
 0x885   :  { %v625_v23 = vsel %vm83_vm1, %v599_v22, %v624_v21 }
 0x886   :  { %v627_v24 = vadd.f32 %v980_v20, %v625_v23 }
 0x888   :  { %v983_v26 = vmul.f32 -1.442695, %v627_v24  ;;  %v648_v27 = vrot.slane %v627_v24, 2 }
 0x88a   :  { %1054 = vpow2.f32 %v983_v26  ;;  %v650_v28 = vmul.f32 %v648_v27, %v1304_v25 }
 0x88c   :  { %v984_v29 = vmul.f32 -1.442695, %v650_v28 }
 0x88e   :  { %1056 = vpow2.f32 %v984_v29 }
 0x890   :  { %v1055_v30 = vpop.eup %1054 }
 0x891   :  { %v631_v31 = vadd.f32 1.0, %v1055_v30 }
 0x893   :  { %1058 = vrcp.f32 %v631_v31  ;;  %v643_v46 = vand.u32 2147483648, %v631_v31  ;;  %vm637_vm4 = vweird.f32 %v631_v31  ;;  %v641_v48 = vand.u32 2147483647, %v631_v31 }
 0x894   :  { %v1057_v32 = vpop.eup %1056 }
 0x895   :  { %v654_v33 = vadd.f32 1.0, %v1057_v32  ;;  %v644_v53 = vor.u32 1.1754944e-38, %v643_v46  ;;  %vm642_vm7 = vcmp.eq.f32.partialorder %v641_v48, 8.507059e+37  ;;  %v992_v46 = vld [vmem:[%s1467_s0 + $0x1c] sm:$0xf] }
 0x897   :  { %1060 = vrcp.f32 %v654_v33  ;;  %v666_v41 = vand.u32 2147483648, %v654_v33  ;;  %v664_v43 = vand.u32 2147483647, %v654_v33  ;;  %vm660_vm2 = vweird.f32 %v654_v33 }
 0x899   :  { %v1059_v34 = vpop.eup %1058  ;;  %v667_v47 = vor.u32 1.1754944e-38, %v666_v41  ;;  %vm665_vm5 = vcmp.eq.f32.partialorder %v664_v43, 8.507059e+37 }
 0x89a   :  { %v633_v35 = vmul.f32 %v1059_v34, %v631_v31  ;;  %vm638_vm15 = vweird.f32 %v1059_v34 }
 0x89b   :  { %vm639_vm6 = vmor %vm637_vm4, %vm638_vm15 }
 0x89c   :  { %v634_v36 = vsub.f32 1.0, %v633_v35 }
 0x89d   :  { %v1061_v37 = vpop.eup %1060 }
 0x89e   :  { %v656_v38 = vmul.f32 %v1061_v37, %v654_v33  ;;  %v635_v39 = vmul.f32 %v1059_v34, %v634_v36  ;;  %vm661_vm14 = vweird.f32 %v1061_v37 }
 0x89f   :  { %vm662_vm3 = vmor %vm660_vm2, %vm661_vm14 }
 0x8a0   :  { %v657_v40 = vsub.f32 1.0, %v656_v38  ;;  %v636_v44 = vadd.f32 %v1059_v34, %v635_v39 }
 0x8a2   :  { %v658_v42 = vmul.f32 %v1061_v37, %v657_v40  ;;  %v640_v51 = vsel %vm639_vm6, %v1059_v34, %v636_v44 }
 0x8a3   :  { %v645_v55 = vsel %vm642_vm7, %v644_v53, %v640_v51 }
 0x8a4   :  { %v659_v45 = vadd.f32 %v1061_v37, %v658_v42  ;;  %v672_v58 = vmul.f32 %v645_v55, %v570_v62 }
 0x8a6   :  { %v663_v49 = vsel %vm662_vm3, %v1061_v37, %v659_v45 }
 0x8a7   :  { %v668_v50 = vsel %vm665_vm5, %v667_v47, %v663_v49 }
 0x8a8   :  { %v670_v52 = vmul.f32 2.0, %v668_v50 }
 0x8aa   :  { %v985_v54 = vadd.f32 -1.0, %v670_v52 }
 0x8ac   :  { %v673_v57 = vmul.f32 %v985_v54, %v645_v55 }
 0x8ae   :  { %675 = vrot.lane.b32.xlu1 %v673_v57, %s1112_s22 }
 0x920   :  { %v676_v0 = vpop.permute.xlu1 %675 }
 0x921   :  { %v678_v1 = vadd.f32 %v676_v0, %v672_v58 }
 0x923   :  { %1062 = vtanh.f32 %v678_v1 }
 0x929   :  { %v1063_v2 = vpop.eup %1062 }
 0x92a   :  { %v680_v3 = vmul.f32 %v1063_v2, %v668_v50 }
 0x92c   :  { %684 = vst [vmem:[#allocation1] ss:$4 sm:$0xff] %v680_v3 }
 0x933   :  { %v685_v4 = vld.sshfl [vmem:[#allocation1] sm:$0xff pattern:$0x73625140] }
 0x934   :  { %686 = vrot.lane.b32.xlu2 %v685_v4, %s1112_s22 }
 0x98e   :  { %v687_v5 = vpop.permute.xlu2 %686 }
 0x98f   :  { %987 = vmatmul.msk.f32.vlgmr.msrb.gmra.mxu0 %vm34_vm0, %v687_v5  ;;  %988 = vmatmul.msk.f32.vlgmr.msrb.gmra.mxu1 %vm34_vm0, %v687_v5 }
 0xa0c   :  { %v727_v6 = vpop.f32.mrf.mxu1  ;;  %v707_v9 = vpop.f32.mrf.mxu0 }
 0xa0d   :  { %v732_v8 = vrot.slane %v727_v6, 6 }
 0xa0f   :  { %v733_v10 = vsel %vm83_vm1, %v707_v9, %v732_v8 }
 0xa10   :  { %v735_v11 = vadd.f32 %v986_v7, %v733_v10 }
 0xa12   :  { %v989_v12 = vmul.f32 -1.442695, %v735_v11  ;;  %v756_v13 = vrot.slane %v735_v11, 2 }
 0xa14   :  { %1064 = vpow2.f32 %v989_v12  ;;  %v758_v14 = vmul.f32 %v756_v13, %v1304_v25 }
 0xa16   :  { %v990_v15 = vmul.f32 -1.442695, %v758_v14 }
 0xa18   :  { %1066 = vpow2.f32 %v990_v15 }
 0xa1a   :  { %v1065_v56 = vpop.eup %1064 }
 0xa1b   :  { %v739_v60 = vadd.f32 1.0, %v1065_v56 }
 0xa1d   :  { %1068 = vrcp.f32 %v739_v60  ;;  %v751_v27 = vand.u32 2147483648, %v739_v60  ;;  %vm745_vm12 = vweird.f32 %v739_v60  ;;  %v749_v29 = vand.u32 2147483647, %v739_v60 }
 0xa1e   :  { %v1067_v61 = vpop.eup %1066 }
 0xa1f   :  { %v762_v59 = vadd.f32 1.0, %v1067_v61  ;;  %v752_v34 = vor.u32 1.1754944e-38, %v751_v27  ;;  %vm750_vm15 = vcmp.eq.f32.partialorder %v749_v29, 8.507059e+37  ;;  %v897_v27 = vld [vmem:[%s1469_s2] sm:$0xff] }
 0xa21   :  { %1070 = vrcp.f32 %v762_v59  ;;  %v774_v21 = vand.u32 2147483648, %v762_v59  ;;  %v772_v23 = vand.u32 2147483647, %v762_v59  ;;  %vm768_vm10 = vweird.f32 %v762_v59 }
 0xa23   :  { %v1069_v62 = vpop.eup %1068  ;;  %v775_v28 = vor.u32 1.1754944e-38, %v774_v21  ;;  %vm773_vm13 = vcmp.eq.f32.partialorder %v772_v23, 8.507059e+37  ;;  %v900_v21 = vld [vmem:[%s1469_s2 + $0x18] sm:$0xff]  ;;  %v898_v23 = vld [vmem:[%s1469_s2 + $0x8] sm:$0xff] }
 0xa24   :  { %v741_v63 = vmul.f32 %v1069_v62, %v739_v60  ;;  %vm746_vm9 = vweird.f32 %v1069_v62 }
 0xa25   :  { %vm747_vm14 = vmor %vm745_vm12, %vm746_vm9 }
 0xa26   :  { %v742_v16 = vsub.f32 1.0, %v741_v63 }
 0xa27   :  { %v1071_v17 = vpop.eup %1070 }
 0xa28   :  { %v764_v18 = vmul.f32 %v1071_v17, %v762_v59  ;;  %v743_v19 = vmul.f32 %v1069_v62, %v742_v16  ;;  %vm769_vm8 = vweird.f32 %v1071_v17 }
 0xa29   :  { %vm770_vm11 = vmor %vm768_vm10, %vm769_vm8 }
 0xa2a   :  { %v765_v20 = vsub.f32 1.0, %v764_v18  ;;  %v744_v24 = vadd.f32 %v1069_v62, %v743_v19  ;;  %v903_v18 = vld [vmem:[%s1469_s2 + $0x30] sm:$0xff]  ;;  %v902_v19 = vld [vmem:[%s1469_s2 + $0x28] sm:$0xff] }
 0xa2c   :  { %v766_v22 = vmul.f32 %v1071_v17, %v765_v20  ;;  %v748_v32 = vsel %vm747_vm14, %v1069_v62, %v744_v24  ;;  %v901_v20 = vld [vmem:[%s1469_s2 + $0x20] sm:$0xff] }
 0xa2d   :  { %v753_v36 = vsel %vm750_vm15, %v752_v34, %v748_v32 }
 0xa2e   :  { %v767_v26 = vadd.f32 %v1071_v17, %v766_v22  ;;  %v780_v38 = vmul.f32 %v753_v36, %v678_v1  ;;  %v899_v22 = vld [vmem:[%s1469_s2 + $0x10] sm:$0xff] }
 0xa30   :  { %v771_v30 = vsel %vm770_vm11, %v1071_v17, %v767_v26  ;;  %v904_v17 = vld [vmem:[%s1469_s2 + $0x38] sm:$0xff] }
 0xa31   :  { %v776_v31 = vsel %vm773_vm13, %v775_v28, %v771_v30  ;;  %924 = vmatpush.msra.mxu0 %v904_v17 }
 0xa32   :  { %v778_v33 = vmul.f32 2.0, %v776_v31 }
 0xa33   :  { %925 = vmatpush.msra.mxu0 %v903_v18 }
 0xa34   :  { %v991_v35 = vadd.f32 -1.0, %v778_v33  ;;  %v1003_v33 = vld [vmem:[%s1470_s3] ss:$0 sm:$0xff] }
 0xa35   :  { %926 = vmatpush.msra.mxu0 %v902_v19 }
 0xa36   :  { %v781_v37 = vmul.f32 %v991_v35, %v753_v36 }
 0xa37   :  { %927 = vmatpush.msra.mxu0 %v901_v20 }
 0xa38   :  { %783 = vrot.lane.b32.xlu0 %v781_v37, %s1112_s22 }
 0xa39   :  { %928 = vmatpush.msra.mxu0 %v900_v21 }
 0xa3b   :  { %929 = vmatpush.msra.mxu0 %v899_v22 }
 0xa3d   :  { %930 = vmatpush.msra.mxu0 %v898_v23 }
 0xa3f   :  { %931 = vmatpush.msra.mxu0 %v897_v27 }
 0xaaa   :  { %v784_v39 = vpop.permute.xlu0 %783 }
 0xaab   :  { %v1422_v40 = vadd.f32 %v784_v39, %v780_v38 }
 0xaad   :  { %1072 = vtanh.f32 %v1422_v40 }
 0xab3   :  { %v1073_v41 = vpop.eup %1072 }
 0xab4   :  { %v788_v42 = vmul.f32 %v1073_v41, %v776_v31 }
 0xab6   :  { %792 = vst [vmem:[#allocation1] ss:$4 sm:$0xff] %v788_v42 }
 0xabd   :  { %v793_v43 = vld.sshfl [vmem:[#allocation1] sm:$0xff pattern:$0x73625140] }
 0xabe   :  { %794 = vrot.lane.b32.xlu1 %v793_v43, %s1112_s22 }
 0xb30   :  { %v795_v44 = vpop.permute.xlu1 %794 }
 0xb31   :  { %993 = vmatmul.msk.f32.vlgmr.msrb.gmra.mxu2 %vm34_vm0, %v795_v44  ;;  %994 = vmatmul.msk.f32.vlgmr.msrb.gmra.mxu3 %vm34_vm0, %v795_v44 }
 0xbb4   :  { %v835_v45 = vpop.f32.mrf.mxu3  ;;  %v815_v48 = vpop.f32.mrf.mxu2 }
 0xbb5   :  { %v840_v47 = vrot.slane %v835_v45, 6 }
 0xbb7   :  { %v841_v49 = vsel %vm83_vm1, %v815_v48, %v840_v47 }
 0xbb8   :  { %v843_v50 = vadd.f32 %v992_v46, %v841_v49 }
 0xbba   :  { %v995_v51 = vmul.f32 -1.442695, %v843_v50  ;;  %v864_v52 = vrot.slane %v843_v50, 2 }
 0xbbc   :  { %1074 = vpow2.f32 %v995_v51  ;;  %v866_v53 = vmul.f32 %v864_v52, %v1304_v25 }
 0xbbe   :  { %v996_v54 = vmul.f32 -1.442695, %v866_v53 }
 0xbc0   :  { %1076 = vpow2.f32 %v996_v54 }
 0xbc2   :  { %v1075_v55 = vpop.eup %1074 }
 0xbc3   :  { %v847_v57 = vadd.f32 1.0, %v1075_v55 }
 0xbc5   :  { %1078 = vrcp.f32 %v847_v57  ;;  %v859_v12 = vand.u32 2147483648, %v847_v57  ;;  %vm853_vm5 = vweird.f32 %v847_v57  ;;  %v857_v14 = vand.u32 2147483647, %v847_v57 }
 0xbc6   :  { %v1077_v58 = vpop.eup %1076 }
 0xbc7   :  { %v870_v0 = vadd.f32 1.0, %v1077_v58  ;;  %v860_v59 = vor.u32 1.1754944e-38, %v859_v12  ;;  %vm858_vm8 = vcmp.eq.f32.partialorder %v857_v14, 8.507059e+37 }
 0xbc9   :  { %1080 = vrcp.f32 %v870_v0  ;;  %v882_v8 = vand.u32 2147483648, %v870_v0  ;;  %v880_v10 = vand.u32 2147483647, %v870_v0  ;;  %vm876_vm3 = vweird.f32 %v870_v0 }
 0xbcb   :  { %v1079_v1 = vpop.eup %1078  ;;  %v883_v13 = vor.u32 1.1754944e-38, %v882_v8  ;;  %vm881_vm6 = vcmp.eq.f32.partialorder %v880_v10, 8.507059e+37 }
 0xbcc   :  { %v849_v2 = vmul.f32 %v1079_v1, %v847_v57  ;;  %vm854_vm2 = vweird.f32 %v1079_v1 }
 0xbcd   :  { %vm855_vm7 = vmor %vm853_vm5, %vm854_vm2 }
 0xbce   :  { %v850_v3 = vsub.f32 1.0, %v849_v2 }
 0xbcf   :  { %v1081_v4 = vpop.eup %1080 }
 0xbd0   :  { %v872_v5 = vmul.f32 %v1081_v4, %v870_v0  ;;  %v851_v6 = vmul.f32 %v1079_v1, %v850_v3  ;;  %vm877_vm1 = vweird.f32 %v1081_v4 }
 0xbd1   :  { %vm878_vm4 = vmor %vm876_vm3, %vm877_vm1 }
 0xbd2   :  { %v873_v7 = vsub.f32 1.0, %v872_v5  ;;  %v852_v25 = vadd.f32 %v1079_v1, %v851_v6 }
 0xbd4   :  { %v874_v9 = vmul.f32 %v1081_v4, %v873_v7  ;;  %v856_v60 = vsel %vm855_vm7, %v1079_v1, %v852_v25 }
 0xbd5   :  { %v861_v63 = vsel %vm858_vm8, %v860_v59, %v856_v60 }
 0xbd6   :  { %v875_v11 = vadd.f32 %v1081_v4, %v874_v9  ;;  %v888_v24 = vmul.f32 %v861_v63, %v1422_v40 }
 0xbd8   :  { %v879_v15 = vsel %vm878_vm4, %v1081_v4, %v875_v11 }
 0xbd9   :  { %v884_v56 = vsel %vm881_vm6, %v883_v13, %v879_v15 }
 0xbda   :  { %v886_v61 = vmul.f32 2.0, %v884_v56 }
 0xbdc   :  { %v997_v62 = vadd.f32 -1.0, %v886_v61 }
 0xbde   :  { %v889_v16 = vmul.f32 %v997_v62, %v861_v63 }
 0xbe0   :  { %891 = vrot.lane.b32.xlu2 %v889_v16, %s1112_s22 }
 0xc3a   :  { %v892_v26 = vpop.permute.xlu2 %891 }
 0xc3b   :  { %v894_v28 = vadd.f32 %v892_v26, %v888_v24 }
 0xc3d   :  { %1082 = vtanh.f32 %v894_v28 }
 0xc43   :  { %v1083_v29 = vpop.eup %1082 }
 0xc44   :  { %v896_v30 = vmul.f32 %v1083_v29, %v884_v56 }
 0xc46   :  { %910 = vst [vmem:[#allocation1] ss:$4 sm:$0xff] %v896_v30 }
 0xc4d   :  { %v911_v31 = vld.sshfl [vmem:[#allocation1] sm:$0xff pattern:$0x73625140] }
 0xc4e   :  { %912 = vrot.lane.b32.xlu0 %v911_v31, %s1112_s22 }
 0xcc0   :  { %v913_v32 = vpop.permute.xlu0 %912 }
 0xcc1   :  { %998 = vmatmul.msk.f32.vlgmr.msra.gmra.mxu0 %vm34_vm0, %v913_v32 }
 0xd3e   :  { %v933_v34 = vpop.f32.mrf.mxu0 }
 0xd3f   :  { %v934_v35 = vadd.f32 %v1003_v33, %v933_v34 }
 0xd41   :  { %936 = vst [vmem:[#allocation2] sm:$0x3] %v934_v35 }
 0xd42   :  { %947 = dma.vmem_to_hbm [thread:$0]  %s943_s29, 32, %s945_s5, [#allocation3]  }
 0xd43   :  { %1108 = dma.done.wait [#allocation3], 32  }
 0xd44   :  { %1109 = vsyncadd [#allocation3], 4294967264 }
 0xd45   :  { %952 = vsyncpa [#allocation3], 1 }

</bundles_post_ra>
